<compile_context>
chip_gen: v7x
topology: tpu7x:2x2x1
jax: 0.10.0
libtpu: 0.0.40
codegen_flags: <defaults>
</compile_context>

<pallas_src>
import math

import jax
import jax.numpy as jnp
from jax.experimental import pallas as pl
from jax.experimental.pallas import tpu as pltpu

_LANE = 128
_EPI_SLAB = 256  # lane-slab width for the fused epilogue projection


# --------------------------------------------------------------------------
# Small helpers (padding, tiling plans, hardware query)
# --------------------------------------------------------------------------
def _round_up(x, m):
    return ((x + m - 1) // m) * m


def _pad2d(a, rows, cols):
    pr, pc = rows - a.shape[0], cols - a.shape[1]
    if pr == 0 and pc == 0:
        return a
    return jnp.pad(a, ((0, pr), (0, pc)))


def _prep_operand(a, rows, cols, dtype):
    """Cast + pad in one wrapper-side pass; both skipped when no-ops."""
    if dtype is not None and a.dtype != dtype:
        a = a.astype(dtype)
    return _pad2d(a, rows, cols)


def _vmem_capacity_bytes():
    """Physical VMEM per core; conservative (v7x, 64 MiB) fallback."""
    try:
        info = pltpu.get_tpu_info()
        for attr in ("vmem_capacity_bytes", "vmem_size_bytes", "vmem_bytes"):
            v = getattr(info, attr, None)
            if v:
                return int(v)
    except Exception:
        pass
    return 64 * 1024 * 1024


def _pick_divisor_tile(dim, cap):
    """Largest multiple of 128 dividing `dim` (itself a multiple of 128), <= cap."""
    t = max(_LANE, (min(cap, dim) // _LANE) * _LANE)
    while dim % t:
        t -= _LANE
    return t


def _stream_eff(t):
    """Measured-ish HBM streaming efficiency vs tile size (v6e data)."""
    table = {128: 0.29, 256: 0.63, 384: 0.75}
    if t in table:
        return table[t]
    return min(0.88, 0.85 + 0.01 * (t // 1024))


def _choose_tile(n128, cap, *, min_tiles=1):
    """Pick (tile, padded) minimizing padded_bytes / streaming_efficiency.

    Large tiles are preferred even if they require padding N up to the tile
    multiple (worth ~2-3x streaming efficiency for <~15% extra bytes), but
    wasteful padding for small N is rejected by the cost model.  min_tiles=2
    keeps >=2 row tiles so the "parallel" axis can shard across v7x's 2 TCs.
    """
    cap = max(_LANE, min(cap, n128))
    best = None
    for t in range(_LANE, cap + 1, _LANE):
        padded = _round_up(n128, t)
        if padded // t < min_tiles and n128 // _LANE >= min_tiles:
            continue
        cost = padded / _stream_eff(t)
        if best is None or cost <= best[0]:
            best = (cost, t, padded)
    return best[1], best[2]


def _plan_adj_tiling(n128, rhs_width, acc_width, out_width, w_bytes,
                     adj_it, rhs_it, out_it, budget, tm_cap, tk_cap):
    """Choose (tm, n_pr, tk, n_pk, rhs_resident) for an adj-streamed aggregate
    so the double-buffered working set stays under `budget` bytes."""
    tm, n_pr = _choose_tile(n128, tm_cap, min_tiles=2)  # >=2 row tiles (megacore)
    tk, n_pk = _choose_tile(n128, tk_cap)               # big reduction tiles: cheap
    while True:
        rhs_res = n_pk * rhs_width * rhs_it <= min(budget // 4, 8 << 20)
        used = (2 * tm * tk * adj_it                                  # adj dbl buffer
                + (n_pk * rhs_width * rhs_it if rhs_res
                   else 2 * tk * rhs_width * rhs_it)                  # x / support
                + w_bytes                                             # resident weight
                + 2 * tm * out_width * out_it                         # out dbl buffer
                + tm * acc_width * 4)                                 # f32 accumulator
        if used <= budget or (tm <= _LANE and tk <= _LANE):
            return tm, n_pr, tk, n_pk, rhs_res
        if tk > tm:
            tk = max(_LANE, (tk // 2) // _LANE * _LANE)
            n_pk = _round_up(n128, tk)
        else:
            tm = max(_LANE, (tm // 2) // _LANE * _LANE)
            n_pr = _round_up(n128, tm)


# --------------------------------------------------------------------------
# Kernel bodies
# --------------------------------------------------------------------------
def _make_fused_kernel(x_resident, tk, epi_slab):
    """(adj @ x) @ w + b; adj K-tiled; x VMEM-resident or streamed per K tile."""

    def kernel(adj_ref, x_ref, w_ref, b_ref, o_ref, acc_ref):
        k = pl.program_id(1)

        @pl.when(k == 0)
        def _init():
            acc_ref[...] = jnp.zeros_like(acc_ref)

        if x_resident:
            start = pl.multiple_of(k * tk, _LANE)
            x_blk = x_ref[pl.ds(start, tk), :]
        else:
            x_blk = x_ref[...]
        acc_ref[...] += jnp.dot(adj_ref[...], x_blk,
                                preferred_element_type=jnp.float32)

        @pl.when(k == pl.num_programs(1) - 1)
        def _epilogue():
            acc = acc_ref[...]
            out_w = o_ref.shape[-1]
            # Project in lane slabs (bounds vreg pressure); the second dot uses
            # the f32 accumulator directly — no intermediate downcast.
            j = 0
            while j < out_w:
                width = min(epi_slab, out_w - j)
                sl = slice(j, j + width)
                proj = jnp.dot(acc, w_ref[:, sl],
                               preferred_element_type=jnp.float32)
                o_ref[:, sl] = (proj + b_ref[:, sl]).astype(o_ref.dtype)
                j += width

    return kernel


def _make_agg_kernel(s_resident, tk):
    """adj @ support + b; adj K-tiled; support VMEM-resident or streamed."""

    def kernel(adj_ref, s_ref, b_ref, o_ref, acc_ref):
        k = pl.program_id(1)

        @pl.when(k == 0)
        def _init():
            acc_ref[...] = jnp.zeros_like(acc_ref)

        if s_resident:
            start = pl.multiple_of(k * tk, _LANE)
            s_blk = s_ref[pl.ds(start, tk), :]
        else:
            s_blk = s_ref[...]
        acc_ref[...] += jnp.dot(adj_ref[...], s_blk,
                                preferred_element_type=jnp.float32)

        @pl.when(k == pl.num_programs(1) - 1)
        def _epilogue():
            o_ref[...] = (acc_ref[...] + b_ref[...]).astype(o_ref.dtype)

    return kernel


def _matmul_kernel(a_ref, b_ref, o_ref, acc_ref):
    """Tiled A @ B with K-reduction f32 accumulator (3-axis grid i, j, k)."""
    k = pl.program_id(2)

    @pl.when(k == 0)
    def _():
        acc_ref[...] = jnp.zeros_like(acc_ref)

    acc_ref[...] += jnp.dot(a_ref[...], b_ref[...],
                            preferred_element_type=jnp.float32)

    @pl.when(k == pl.num_programs(2) - 1)
    def _():
        o_ref[...] = acc_ref[...].astype(o_ref.dtype)


# --------------------------------------------------------------------------
# Wrappers
# --------------------------------------------------------------------------
def _matmul(a, b, out_dtype, *, vmem_limit, tile_cap=512):
    """Tiled A[m,k] @ B[k,n] -> [m,n]; every dim is a multiple of 128 and the
    output-column axis is tiled too (keeps the f32 accumulator bounded for
    wide out_f on v7x's 64 MiB VMEM)."""
    m, kd = a.shape
    n = b.shape[1]
    tm = _pick_divisor_tile(m, tile_cap)
    tn = _pick_divisor_tile(n, tile_cap)
    tk = _pick_divisor_tile(kd, tile_cap)
    a_it = jnp.dtype(a.dtype).itemsize
    b_it = jnp.dtype(b.dtype).itemsize
    o_it = jnp.dtype(out_dtype).itemsize
    flops = 2 * m * kd * n
    bytes_acc = (m * kd * a_it * (n // tn)     # A re-streamed per output-col tile
                 + kd * n * b_it * (m // tm)   # B re-streamed per output-row tile
                 + m * n * o_it)
    return pl.pallas_call(
        _matmul_kernel,
        out_shape=jax.ShapeDtypeStruct((m, n), out_dtype),
        grid_spec=pltpu.PrefetchScalarGridSpec(
            num_scalar_prefetch=0,
            grid=(m // tm, n // tn, kd // tk),
            in_specs=[
                pl.BlockSpec((tm, tk), lambda i, j, k: (i, k)),
                pl.BlockSpec((tk, tn), lambda i, j, k: (k, j)),
            ],
            out_specs=pl.BlockSpec((tm, tn), lambda i, j, k: (i, j)),
            scratch_shapes=[pltpu.VMEM((tm, tn), jnp.float32)],
        ),
        compiler_params=pltpu.CompilerParams(
            dimension_semantics=("parallel", "parallel", "arbitrary"),
            vmem_limit_bytes=vmem_limit,
        ),
        cost_estimate=pl.CostEstimate(flops=flops, transcendentals=0,
                                      bytes_accessed=bytes_acc),
    )(a, b)


def gcn_forward(x, adj, weight, bias=None, *, operand_dtype=jnp.bfloat16):
    """GCN layer forward: adj @ (x @ weight) + bias, with a dense adjacency.

    x: [N, in_f], adj: [N, N] (dense), weight: [in_f, out_f], bias: [out_f]|None.

    operand_dtype (default bfloat16) applies only to the *streamed* operands
    (adj / x / support): it halves the N^2 HBM traffic and is MXU-native on
    v6e/v7x.  The weight, bias and all reductions stay float32; output keeps
    x's original dtype.  Pass operand_dtype=None for a pure-f32 path.  If adj
    is already in operand_dtype the wrapper cast is a no-op, so pre-casting
    adj once and reusing it across layers avoids a per-layer N^2 cast pass.
    """
    n, in_f = x.shape
    out_f = weight.shape[1]
    assert adj.shape == (n, n)
    assert weight.shape[0] == in_f

    out_dtype = x.dtype
    stream_dtype = operand_dtype if operand_dtype is not None else x.dtype

    # Generation-aware VMEM budget (v5e/v6e: 128 MiB phys; v7x: 64 MiB phys).
    phys = _vmem_capacity_bytes()
    vmem_limit = min(96 * 1024 * 1024, (phys * 3) // 4)   # ~96M v5e/v6e, ~48M v7x
    budget = (vmem_limit * 17) // 20                      # 85%: headroom
    tm_cap = 512
    tk_cap = 2048 if phys >= 100 * 1024 * 1024 else 1024

    in_f_p = _round_up(in_f, _LANE)
    out_f_p = _round_up(out_f, _LANE)
    n128 = _round_up(n, _LANE)

    adj_it = jnp.dtype(stream_dtype).itemsize
    w_it = jnp.dtype(weight.dtype).itemsize
    out_it = jnp.dtype(out_dtype).itemsize

    if bias is None:
        b_p = jnp.zeros((1, out_f_p), jnp.float32)
    else:
        b_p = _pad2d(bias.reshape(1, out_f).astype(jnp.float32), 1, out_f_p)

    compiler_params = pltpu.CompilerParams(
        dimension_semantics=("parallel", "arbitrary"),
        vmem_limit_bytes=vmem_limit,
    )

    # Fuse (adj @ x) @ w when the N^2 term then carries the smaller feature
    # dim and the resident weight fits comfortably in the VMEM budget.
    fused = (in_f_p <= out_f_p) and (2 * in_f_p * out_f_p * w_it <= budget // 2)

    if fused:
        tm, n_pr, tk, n_pk, x_res = _plan_adj_tiling(
            n128, rhs_width=in_f_p, acc_width=in_f_p, out_width=out_f_p,
            w_bytes=2 * in_f_p * out_f_p * w_it,
            adj_it=adj_it, rhs_it=adj_it, out_it=out_it,
            budget=budget, tm_cap=tm_cap, tk_cap=tk_cap)

        adj_p = _prep_operand(adj, n_pr, n_pk, operand_dtype)
        x_p = _prep_operand(x, n_pk, in_f_p, operand_dtype)
        w_p = _pad2d(weight, in_f_p, out_f_p)

        if x_res:
            # x held VMEM-resident (fetched once), sliced in-kernel per K tile.
            x_spec = pl.BlockSpec((n_pk, in_f_p), lambda i, k: (0, 0))
            x_passes = 1
        else:
            x_spec = pl.BlockSpec((tk, in_f_p), lambda i, k: (k, 0))
            x_passes = n_pr // tm

        flops = 2 * n_pr * n_pk * in_f_p + 2 * n_pr * in_f_p * out_f_p
        bytes_acc = (n_pr * n_pk * adj_it
                     + n_pk * in_f_p * adj_it * x_passes
                     + in_f_p * out_f_p * w_it
                     + n_pr * out_f_p * out_it)

        out_p = pl.pallas_call(
            _make_fused_kernel(x_res, tk, _EPI_SLAB),
            out_shape=jax.ShapeDtypeStruct((n_pr, out_f_p), out_dtype),
            grid_spec=pltpu.PrefetchScalarGridSpec(
                num_scalar_prefetch=0,
                grid=(n_pr // tm, n_pk // tk),
                in_specs=[
                    pl.BlockSpec((tm, tk), lambda i, k: (i, k)),           # adj
                    x_spec,                                                # x
                    pl.BlockSpec((in_f_p, out_f_p), lambda i, k: (0, 0)),  # w
                    pl.BlockSpec((1, out_f_p), lambda i, k: (0, 0)),       # bias
                ],
                out_specs=pl.BlockSpec((tm, out_f_p), lambda i, k: (i, 0)),
                scratch_shapes=[pltpu.VMEM((tm, in_f_p), jnp.float32)],
            ),
            compiler_params=compiler_params,
            cost_estimate=pl.CostEstimate(flops=flops, transcendentals=0,
                                          bytes_accessed=bytes_acc),
        )(adj_p, x_p, w_p, b_p)
    else:
        tm, n_pr, tk, n_pk, s_res = _plan_adj_tiling(
            n128, rhs_width=out_f_p, acc_width=out_f_p, out_width=out_f_p,
            w_bytes=0,
            adj_it=adj_it, rhs_it=adj_it, out_it=out_it,
            budget=budget, tm_cap=tm_cap, tk_cap=tk_cap)

        adj_p = _prep_operand(adj, n_pr, n_pk, operand_dtype)
        x_p = _prep_operand(x, n_pk, in_f_p, operand_dtype)
        w_p = _pad2d(weight, in_f_p, out_f_p)

        # support = x @ w (f32 accumulation), stored in the streaming dtype so
        # the N^2 aggregate is MXU-native at half the HBM bytes.
        support = _matmul(x_p, w_p, stream_dtype, vmem_limit=vmem_limit)

        if s_res:
            s_spec = pl.BlockSpec((n_pk, out_f_p), lambda i, k: (0, 0))
            s_passes = 1
        else:
            s_spec = pl.BlockSpec((tk, out_f_p), lambda i, k: (k, 0))
            s_passes = n_pr // tm

        flops = 2 * n_pr * n_pk * out_f_p
        bytes_acc = (n_pr * n_pk * adj_it
                     + n_pk * out_f_p * adj_it * s_passes
                     + n_pr * out_f_p * out_it)

        out_p = pl.pallas_call(
            _make_agg_kernel(s_res, tk),
            out_shape=jax.ShapeDtypeStruct((n_pr, out_f_p), out_dtype),
            grid_spec=pltpu.PrefetchScalarGridSpec(
                num_scalar_prefetch=0,
                grid=(n_pr // tm, n_pk // tk),
                in_specs=[
                    pl.BlockSpec((tm, tk), lambda i, k: (i, k)),       # adj
                    s_spec,                                            # support
                    pl.BlockSpec((1, out_f_p), lambda i, k: (0, 0)),   # bias
                ],
                out_specs=pl.BlockSpec((tm, out_f_p), lambda i, k: (i, 0)),
                scratch_shapes=[pltpu.VMEM((tm, out_f_p), jnp.float32)],
            ),
            compiler_params=compiler_params,
            cost_estimate=pl.CostEstimate(flops=flops, transcendentals=0,
                                          bytes_accessed=bytes_acc),
        )(adj_p, support, b_p)

    return out_p[:n, :out_f]


# --------------------------------------------------------------------------
# Self-test
# --------------------------------------------------------------------------
if __name__ == "__main__":
    def make_inputs(key, n, in_f, out_f):
        k_x, k_adj, k_w, k_b = jax.random.split(key, 4)
        # Mirrors reset_parameters(): uniform(-stdv, stdv), stdv = 1/sqrt(out_f).
        stdv = 1.0 / math.sqrt(out_f)
        w = jax.random.uniform(k_w, (in_f, out_f), jnp.float32, -stdv, stdv)
        b = jax.random.uniform(k_b, (out_f,), jnp.float32, -stdv, stdv)
        x = jax.random.normal(k_x, (n, in_f), jnp.float32)
        adj_raw = jax.random.uniform(k_adj, (n, n), jnp.float32)
        adj = 0.5 * (adj_raw + adj_raw.T)  # dense symmetric adjacency-like
        return x, adj, w, b

    def ref_fwd(x, adj, w, b):
        support = jnp.dot(x, w, precision="highest")
        out = jnp.dot(adj, support, precision="highest")
        return out + b if b is not None else out

    # 1) Awkward N (not a multiple of 128) -> padding path, fused association,
    #    f32 operands throughout.
    x, adj, w, b = make_inputs(jax.random.PRNGKey(0), 200, 48, 96)
    out = gcn_forward(x, adj, w, b, operand_dtype=None)
    jax.block_until_ready(out)
    ref = ref_fwd(x, adj, w, b)
    assert out.shape == ref.shape and out.dtype == jnp.float32
    assert jnp.allclose(out, ref, atol=5e-2, rtol=2e-2), "f32 fused path mismatch"

    # 2) Same layer with the default bf16-streamed adj/x (f32 accumulation).
    out_bf = gcn_forward(x, adj, w, b)
    jax.block_until_ready(out_bf)
    assert out_bf.dtype == jnp.float32
    assert jnp.allclose(out_bf, ref, atol=0.3, rtol=0.05), "bf16 fused path mismatch"

    # 3) in_f > out_f -> project-first path (x @ w kernel, then adj aggregate),
    #    f32 operands, bias=None.
    x2, adj2, w2, b2 = make_inputs(jax.random.PRNGKey(0), 256, 160, 64)
    out2 = gcn_forward(x2, adj2, w2, None, operand_dtype=None)
    jax.block_until_ready(out2)
    ref2 = ref_fwd(x2, adj2, w2, None)
    assert jnp.allclose(out2, ref2, atol=5e-2, rtol=2e-2), "project-first path mismatch"

    # 4) Project-first path with default bf16 streaming and a bias.
    out2_bf = gcn_forward(x2, adj2, w2, b2)
    jax.block_until_ready(out2_bf)
    ref2b = ref_fwd(x2, adj2, w2, b2)
    assert jnp.allclose(out2_bf, ref2b, atol=0.3, rtol=0.05), "bf16 project-first mismatch"

    print("KERNEL_OK")
</pallas_src>

<mosaic_0001>
module attributes {stable_mosaic.version = 11 : i64} {
  func.func @kernel(%arg0: i32, %arg1: i32, %arg2: memref<128x256xf32, #tpu.memory_space<vmem>>, %arg3: memref<256x128xf32, #tpu.memory_space<vmem>>, %arg4: memref<128x128xf32, #tpu.memory_space<vmem>>, %arg5: memref<1x128xf32, #tpu.memory_space<vmem>>, %arg6: memref<128x128xf32, #tpu.memory_space<vmem>>, %arg7: memref<128x128xf32, #tpu.memory_space<vmem>>) attributes {dimension_semantics = [#tpu.dimension_semantics<parallel>, #tpu.dimension_semantics<arbitrary>], iteration_bounds = array<i64: 2, 1>, scalar_prefetch = 0 : i64, scratch_operands = 1 : i64, tpu.core_type = #tpu.core_type<tc>, window_params = [{transform_indices = @transform_0, window_bounds = array<i64: 128, 256>}, {pipeline_mode = #tpu.pipeline_mode<synchronous>, transform_indices = @transform_1, window_bounds = array<i64: 256, 128>}, {pipeline_mode = #tpu.pipeline_mode<synchronous>, transform_indices = @transform_2, window_bounds = array<i64: 128, 128>}, {pipeline_mode = #tpu.pipeline_mode<synchronous>, transform_indices = @transform_3, window_bounds = array<i64: 1, 128>}, {transform_indices = @transform_4, window_bounds = array<i64: 128, 128>}]} {
    %c0_i32 = arith.constant 0 : i32
    %0 = arith.cmpi eq, %arg1, %c0_i32 : i32
    %1 = arith.extui %0 : i1 to i32
    %c0_i32_0 = arith.constant 0 : i32
    %2 = arith.cmpi ne, %1, %c0_i32_0 : i32
    scf.if %2 {
      %cst_9 = arith.constant 0.000000e+00 : f32
      %15 = vector.broadcast %cst_9 : f32 to vector<128x128xf32>
      %c0_10 = arith.constant 0 : index
      %c0_11 = arith.constant 0 : index
      %16 = vector.load %arg7[%c0_10, %c0_11] : memref<128x128xf32, #tpu.memory_space<vmem>>, vector<128x128xf32>
      tpu.vector_store %arg7[%c0_10, %c0_11], %15 {strides = array<i32>} : memref<128x128xf32, #tpu.memory_space<vmem>>, vector<128x128xf32>,
    } else {
    }
    %c256_i32 = arith.constant 256 : i32
    %3 = arith.muli %arg1, %c256_i32 : i32
    %4 = tpu.assume_multiple %3, 128 : i32
    %5 = arith.index_cast %4 : i32 to index
    %c0 = arith.constant 0 : index
    %6 = vector.load %arg3[%5, %c0] : memref<256x128xf32, #tpu.memory_space<vmem>>, vector<256x128xf32>
    %c0_1 = arith.constant 0 : index
    %c0_2 = arith.constant 0 : index
    %7 = vector.load %arg7[%c0_1, %c0_2] : memref<128x128xf32, #tpu.memory_space<vmem>>, vector<128x128xf32>
    %c0_3 = arith.constant 0 : index
    %c0_4 = arith.constant 0 : index
    %8 = vector.load %arg2[%c0_3, %c0_4] : memref<128x256xf32, #tpu.memory_space<vmem>>, vector<128x256xf32>
    %cst = arith.constant dense<0.000000e+00> : vector<128x128xf32>
    %9 = tpu.matmul %8, %6, %cst {dimension_numbers = #tpu.dot_dimension_numbers<[1], [0], [0], [1], [0, 0, 1, 1], [], []>} : vector<128x256xf32>, vector<256x128xf32>, vector<128x128xf32> -> vector<128x128xf32>
    %10 = arith.addf %7, %9 : vector<128x128xf32>
    %c0_5 = arith.constant 0 : index
    %c0_6 = arith.constant 0 : index
    %11 = vector.load %arg7[%c0_5, %c0_6] : memref<128x128xf32, #tpu.memory_space<vmem>>, vector<128x128xf32>
    tpu.vector_store %arg7[%c0_5, %c0_6], %10 {strides = array<i32>} : memref<128x128xf32, #tpu.memory_space<vmem>>, vector<128x128xf32>,
    %c0_i32_7 = arith.constant 0 : i32
    %12 = arith.cmpi eq, %arg1, %c0_i32_7 : i32
    %13 = arith.extui %12 : i1 to i32
    %c0_i32_8 = arith.constant 0 : i32
    %14 = arith.cmpi ne, %13, %c0_i32_8 : i32
    scf.if %14 {
      %c0_9 = arith.constant 0 : index
      %c0_10 = arith.constant 0 : index
      %15 = vector.load %arg7[%c0_9, %c0_10] : memref<128x128xf32, #tpu.memory_space<vmem>>, vector<128x128xf32>
      %c0_11 = arith.constant 0 : index
      %c0_12 = arith.constant 0 : index
      %16 = vector.load %arg4[%c0_11, %c0_12] : memref<128x128xf32, #tpu.memory_space<vmem>>, vector<128x128xf32>
      %cst_13 = arith.constant dense<0.000000e+00> : vector<128x128xf32>
      %17 = tpu.matmul %15, %16, %cst_13 {dimension_numbers = #tpu.dot_dimension_numbers<[1], [0], [0], [1], [0, 0, 1, 1], [], []>} : vector<128x128xf32>, vector<128x128xf32>, vector<128x128xf32> -> vector<128x128xf32>
      %c0_14 = arith.constant 0 : index
      %c0_15 = arith.constant 0 : index
      %18 = vector.load %arg5[%c0_14, %c0_15] : memref<1x128xf32, #tpu.memory_space<vmem>>, vector<1x128xf32>
      %19 = vector.broadcast %18 : vector<1x128xf32> to vector<128x128xf32>
      %20 = arith.addf %17, %19 : vector<128x128xf32>
      %c0_16 = arith.constant 0 : index
      %c0_17 = arith.constant 0 : index
      %21 = vector.load %arg6[%c0_16, %c0_17] : memref<128x128xf32, #tpu.memory_space<vmem>>, vector<128x128xf32>
      tpu.vector_store %arg6[%c0_16, %c0_17], %20 {strides = array<i32>} : memref<128x128xf32, #tpu.memory_space<vmem>>, vector<128x128xf32>,
    } else {
    }
    return
  }
  func.func @transform_0(%arg0: i32, %arg1: i32) -> (i32, i32) {
    %c0_i32 = arith.constant 0 : i32
    return %arg0, %arg1 : i32, i32
  }
  func.func @transform_1(%arg0: i32, %arg1: i32) -> (i32, i32) {
    %c0_i32 = arith.constant 0 : i32
    %c0_i32_0 = arith.constant 0 : i32
    %c0_i32_1 = arith.constant 0 : i32
    return %c0_i32, %c0_i32_0 : i32, i32
  }
  func.func @transform_2(%arg0: i32, %arg1: i32) -> (i32, i32) {
    %c0_i32 = arith.constant 0 : i32
    %c0_i32_0 = arith.constant 0 : i32
    %c0_i32_1 = arith.constant 0 : i32
    return %c0_i32, %c0_i32_0 : i32, i32
  }
  func.func @transform_3(%arg0: i32, %arg1: i32) -> (i32, i32) {
    %c0_i32 = arith.constant 0 : i32
    %c0_i32_0 = arith.constant 0 : i32
    %c0_i32_1 = arith.constant 0 : i32
    return %c0_i32, %c0_i32_0 : i32, i32
  }
  func.func @transform_4(%arg0: i32, %arg1: i32) -> (i32, i32) {
    %c0_i32 = arith.constant 0 : i32
    %c0_i32_0 = arith.constant 0 : i32
    return %arg0, %c0_i32 : i32, i32
  }
}

</mosaic_0001>

<bundles_post_ra>
// kernel: tpu_custom_call.1
= control target key start
LH: loop header
LB: loop body
LE: loop exit
PB: predicated region body
PF: predicated region fallthrough
CT: control target
= control target key end

     0   :  { %9 = vsyncpa [#allocation4], 0  ;;  %s1732_s0 = inlined_call_operand.hbm [shape: f32[256,256], index: 0, kind: input, shape index: {}]   ;;  %s1733_s1 = inlined_call_operand.hbm [shape: f32[256,128], index: 1, kind: input, shape index: {}]   ;;  %s1734_s2 = inlined_call_operand.hbm [shape: f32[128,128], index: 2, kind: input, shape index: {}]   ;;  %s1735_s3 = inlined_call_operand.vmem [shape: f32[1,128], index: 3, kind: input, shape index: {}]   ;;  %s1736_s4 = inlined_call_operand.hbm [shape: f32[256,128], index: 4, kind: output, shape index: {}]  }
   0x1   :  { %11 = vsyncpa [#allocation4 + $0x1], 0 }
   0x2   :  { %12 = vsyncpa [#allocation7], 0 }
   0x3   :  { %13 = vsyncpa [#allocation5], 0 }
   0x4   :  { %15 = vsyncpa [#allocation5 + $0x1], 0  ;;  %s1420_s15 = smov 0   ;;  %s1422_s16 = smov 0  }
   0x5   :  { %s1424_s17 = smov 0   ;;  %s1426_s18 = smov 0  }
   0x6   :  { %s1428_s19 = smov 0   ;;  %s1430_s20 = smov 0  }
   0x7 LB: > { %s866_s21 = sadd.s32 4294967295, %s1383_s20   ;;  %s867_s22 = sadd.s32 4294967294, %s1383_s20   ;;  %s1383_s20 = sphi %s1430_s20, %s21_s20   ;;  %s1379_s19 = sphi %s1428_s19, %s1758_s19   ;;  %s1375_s18 = sphi %s1426_s18, %s1757_s18   ;;  %s1371_s17 = sphi %s1424_s17, %s1756_s17   ;;  %s1367_s16 = sphi %s1422_s16, %s1755_s16   ;;  %s1363_s15 = sphi %s1420_s15, %s1754_s15  }
   0x8   : > { %p55_p0 = scmp.ne.s32.totalorder %s1367_s16, %s1363_s15  ;;  %p1454_p1 = scmp.eq.s32.totalorder %s866_s21, 0 }
   0x9   : > { %p1458_p2 = scmp.eq.s32.totalorder %s866_s21, 1  ;;  %p148_p3 = scmp.eq.s32.totalorder %s867_s22, 1 }
   0xa   : > { %s1741_s23 = scalar_select %p1454_p1, 1, 0 }
   0xb   : > { %p1464_p4 = por %p1454_p1, %p55_p0  ;;  %p868_p5 = scmp.ge.s32.totalorder %s1383_s20, 1 }
   0xc   : > { %p1469_p6 = por %p148_p3, %p55_p0  ;;  %p155_p7 = scmp.lt.s32.totalorder %s1383_s20, 3 }
   0xd   : > { %s1743_s25 = scalar_select %p1464_p4, 1, 0 }
   0xe   : > { %s1744_s26 = scalar_select %p1469_p6, 1, 0 }
   0xf   : > { %p1474_p8 = pnand %p868_p5, %p155_p7  ;;  %s1385_s28 = smov [#allocation6]  }
  0x10   : > { %s167_s29 = sshll.u32 %s1385_s28, 4  ;;  %s1386_s5 = smov [#allocation8]   ;;  %s1478_s29 = int_to_ptr.vmem [resolvable:$true] %s167_s29 }
  0x11   : > { %p1134_p9 = pneg %p1474_p8  ;;  %s180_s6 = sshll.u32 %s1386_s5, 4  ;;  %s1489_s6 = int_to_ptr.vmem [resolvable:$true] %s180_s6 }
  0x12   : > { %s1211_s9 = scalar_lea.hbm %s1733_s1, 4096 }
  0x13   : > { %p1485_p11 = pnand %p1134_p9, %p1454_p1  ;;  %p1212_p12 = scmp.ne.s32.totalorder %s1733_s1, %s1211_s9 }
  0x14   : > { %p1218_p5 = scmp.lt.u32.totalorder %s1211_s9, %s1733_s1 }
  0x15   : > { %p1213_p13 = pneg %p1485_p11 }
  0x17   : > { %p1214_p0 = pnand %p1213_p13, %p1212_p12 }
  0x19   : > { %p1215_p3 = pneg %p1214_p0 }
  0x1b   : > { %p1220_p7 = pnand %p1218_p5, %p1215_p3 }
  0x1d   : > { %1223 = shalt.err (!%p1220_p7)
}
  0x1e   : > { %s1224_s14 = scalar_lea.vmem %s1478_s29, 4096  ;;  %p1232_p1 = scmp.lt.s32.totalorder %s1478_s29, %s1478_s29 }
  0x1f   : > { %p1225_p9 = scmp.ne.s32.totalorder %s1478_s29, %s1224_s14  ;;  %p1233_p12 = scmp.lt.s32.totalorder %s1224_s14, %s1224_s14 }
  0x21   : > { %p1227_p10 = pnand %p1225_p9, %p1213_p13  ;;  %p1234_p0 = por %p1233_p12, %p1232_p1 }
  0x23   : > { %p1228_p6 = pneg %p1227_p10 }
  0x25   : > { %p1235_p4 = pnand %p1234_p0, %p1228_p6 }
  0x27   : > { %1238 = shalt.err (!%p1235_p4)
}
  0x28   : > { %s1387_s21 = smov 128   ;;  %s1388_s22 = smov 8  }
  0x29   : > { %1137 = dma.hbm_to_vmem [thread:$0]  (!%p1485_p11), %s1733_s1, 4096, %s1478_s29, [#allocation7], %s1387_s21, %s1387_s21, %s1388_s22  }
  0x2a   : > { %s1239_s9 = scalar_lea.hbm %s1734_s2, 2048 }
  0x2b   : > { %p1240_p1 = scmp.ne.s32.totalorder %s1734_s2, %s1239_s9  ;;  %p1246_p10 = scmp.lt.u32.totalorder %s1239_s9, %s1734_s2 }
  0x2d   : > { %p1242_p4 = pnand %p1240_p1, %p1213_p13 }
  0x2f   : > { %p1243_p6 = pneg %p1242_p4 }
  0x31   : > { %p1248_p3 = pnand %p1246_p10, %p1243_p6 }
  0x33   : > { %1251 = shalt.err (!%p1248_p3)
}
  0x34   : > { %s1252_s29 = scalar_lea.vmem %s1489_s6, 2048  ;;  %p1260_p12 = scmp.lt.s32.totalorder %s1489_s6, %s1489_s6 }
  0x35   : > { %p1253_p5 = scmp.ne.s32.totalorder %s1489_s6, %s1252_s29  ;;  %p1261_p0 = scmp.lt.s32.totalorder %s1252_s29, %s1252_s29 }
  0x37   : > { %p1255_p7 = pnand %p1253_p5, %p1213_p13  ;;  %p1262_p1 = por %p1261_p0, %p1260_p12 }
  0x39   : > { %p1256_p9 = pneg %p1255_p7 }
  0x3b   : > { %p1263_p4 = pnand %p1262_p1, %p1256_p9 }
  0x3d   : > { %1266 = shalt.err (!%p1263_p4)
}
  0x3e   : > { %1140 = dma.hbm_to_vmem [thread:$0]  (!%p1485_p11), %s1734_s2, 2048, %s1489_s6, [#allocation7], %s1387_s21, %s1387_s21, %s1388_s22  }
  0x3f   : > { %s33_s5 = sadd.s32 1, %s1379_s19  ;;  %s42_s7 = sadd.s32 1, %s1371_s17 }
  0x40   : > { %p35_p13 = scmp.ge.s32.totalorder %s33_s5, 2  ;;  %p49_p6 = scmp.ne.s32.totalorder %s1371_s17, %s1367_s16 }
  0x41   : > { %p50_p10 = scmp.eq.s32.totalorder %s1383_s20, 0  ;;  %p1151_p3 = scmp.lt.s32.totalorder %s1383_s20, 2 }
  0x42   : > { %s1760_s5 = smov (%p35_p13, %s33_s5), 0  ;;  %p1553_p7 = por %p1458_p2, %p49_p6 }
  0x43   : > { %p51_p5 = por %p50_p10, %p49_p6  ;;  %s37_s8 = ssub.s32 %s1379_s19, %s1760_s5 }
  0x44   : > { %s1747_s30 = scalar_select %p1553_p7, 1, 0 }
  0x45   : > { %s197_s9 = sand.u32 1, %s1371_s17   ;;  %p40_p9 = scmp.eq.s32.totalorder %s37_s8, 0 }
  0x46   : > { %s872_s6 = sshll.u32 %s197_s9, 8  ;;  %s888_s21 = sshll.u32 %s1379_s19, 12 }
  0x47   : > { %s1562_s22 = scalar_select %p40_p9, %s1371_s17, %s42_s7  }
  0x48   : > { %s1567_s12 = scalar_lea.hbm %s1732_s0, %s888_s21  ;;  %s201_s24 = scalar_lea.vmem [#allocation3], %s872_s6 }
  0x49   : > { %s211_s13 = sshll.u32 %s201_s24, 4  ;;  %p1571_p2 = pnand %p1151_p3, %p51_p5  ;;  %s1575_s13 = int_to_ptr.vmem [resolvable:$true] %s211_s13 }
  0x4a   : > { %s1577_s14 = scalar_lea.sflag [#allocation4], %s197_s9  ;;  %s1267_s28 = scalar_lea.hbm %s1567_s12, 4096 }
  0x4b   : > { %p1268_p11 = scmp.ne.s32.totalorder %s1567_s12, %s1267_s28  ;;  %p1269_p12 = pneg %p1571_p2 }
  0x4c   : > { %s1272_s6 = scalar_lea.hbm %s1732_s0, 8192  ;;  %p1273_p4 = scmp.lt.u32.totalorder %s1567_s12, %s1732_s0 }
  0x4d   : > { %p1270_p0 = pnand %p1269_p12, %p1268_p11  ;;  %p1274_p13 = scmp.lt.u32.totalorder %s1272_s6, %s1267_s28 }
  0x4e   : > { %p1276_p10 = scmp.lt.u32.totalorder %s1267_s28, %s1567_s12 }
  0x4f   : > { %p1271_p1 = pneg %p1270_p0  ;;  %p1275_p6 = por %p1274_p13, %p1273_p4 }
  0x51   : > { %p1277_p3 = por %p1276_p10, %p1275_p6 }
  0x53   : > { %p1278_p5 = pnand %p1277_p3, %p1271_p1 }
  0x55   : > { %1281 = shalt.err (!%p1278_p5)
}
  0x56   : > { %s1282_s9 = scalar_lea.vmem %s1575_s13, 4096  ;;  %s1389_s11 = smov [#allocation3]  }
  0x57   : > { %p1283_p9 = scmp.ne.s32.totalorder %s1575_s13, %s1282_s9  ;;  %s1287_s24 = sshll.u32 %s1389_s11, 4  ;;  %s1288_s24 = int_to_ptr.vmem [resolvable:$false] %s1287_s24 }
  0x58   : > { %s1289_s7 = scalar_lea.vmem %s1288_s24, 8192  ;;  %p1290_p7 = scmp.lt.s32.totalorder %s1575_s13, %s1288_s24 }
  0x59   : > { %p1285_p11 = pnand %p1283_p9, %p1269_p12  ;;  %p1291_p4 = scmp.lt.s32.totalorder %s1289_s7, %s1282_s9 }
  0x5b   : > { %p1286_p0 = pneg %p1285_p11  ;;  %p1292_p13 = por %p1291_p4, %p1290_p7 }
  0x5d   : > { %p1293_p6 = pnand %p1292_p13, %p1286_p0 }
  0x5f   : > { %1296 = shalt.err (!%p1293_p6)
}
  0x60   : > { %s1390_s28 = smov 256   ;;  %s1391_s8 = smov 16  }
  0x61   : > { %1144 = dma.hbm_to_vmem [thread:$0]  (!%p1571_p2), %s1567_s12, 4096, %s1575_s13, %s1577_s14, %s1390_s28, %s1390_s28, %s1391_s8  }
  0x62   : > { %223 = sbr.rel (%p1474_p8) target bundleno = 649 (0x289), region = 36  ;;  %s1608_s6 = sand.u32 (!%p1474_p8), 1, %s1367_s16  }
  0x63   : > { %s877_s21 = sshll.u32 (!%p1474_p8), %s1608_s6, 8  ;;  %s226_s10 = scalar_lea.sflag (!%p1474_p8), [#allocation4], %s1608_s6 }
  0x64   : > { %s1612_s9 = scalar_lea.vmem (!%p1474_p8), [#allocation3], %s877_s21  ;;  %p1749_p7 = scmp.ne.s32.totalorder (!%p1474_p8), %s1743_s25, 0 }
  0x69   : > { %1350 = dma.done.wait (%p1749_p7), %s226_s10, 4096  }
  0x6a   : > { %1352 = vsyncadd (%p1749_p7), %s226_s10, 4294963200  ;;  %p1750_p2 = scmp.ne.s32.totalorder %s1741_s23, 0 }
  0x6c   : > { %1354 = dma.done.wait (%p1750_p2), [#allocation7], 6144  }
  0x6d   : > { %1356 = vsyncadd (%p1750_p2), [#allocation7], 4294961152  ;;  %v303_v0 = vld [vmem:[#allocation6 + $0x80] sm:$0xff]  ;;  %v304_v1 = vld [vmem:[#allocation6 + $0x88] sm:$0xff]  ;;  %s880_s23 = sshll.u32 %s1608_s6, 7  ;;  %s889_s13 = sshll.u32 %s1375_s18, 11 }
  0x6e   : > { %v287_v2 = vld [vmem:[#allocation6] sm:$0xff]  ;;  %v1058_v3 = vpack.c.bf16 %v304_v1, %v303_v0  ;;  %v288_v4 = vld [vmem:[#allocation6 + $0x8] sm:$0xff]  ;;  %v305_v5 = vld [vmem:[#allocation6 + $0x90] sm:$0xff]  ;;  %s1658_s12 = scalar_lea.vmem [#allocation9], %s880_s23  ;;  %s1679_s24 = scalar_lea.hbm %s1736_s4, %s889_s13 }
  0x6f   : > { %v306_v6 = vld [vmem:[#allocation6 + $0x98] sm:$0xff]  ;;  %v1060_v7 = vpack.c.bf16 %v288_v4, %v287_v2  ;;  %v289_v9 = vld [vmem:[#allocation6 + $0x10] sm:$0xff]  ;;  %v307_v11 = vld [vmem:[#allocation6 + $0xa0] sm:$0xff]  ;;  %s761_s29 = sshll.u32 %s1658_s12, 4  ;;  %s748_s7 = scalar_lea.sflag [#allocation5], %s1608_s6  ;;  %s1681_s29 = int_to_ptr.vmem [resolvable:$true] %s761_s29 }
  0x70   : > { %v1062_v8 = vpack.c.bf16 %v306_v6, %v305_v5  ;;  %v290_v10 = vld [vmem:[#allocation6 + $0x18] sm:$0xff]  ;;  %1059 = vmatprep.subr.bf16.mxu0 %v1058_v3  ;;  %v308_v12 = vld [vmem:[#allocation6 + $0xa8] sm:$0xff]  ;;  %v291_v15 = vld [vmem:[#allocation6 + $0x20] sm:$0xff]  ;;  %s1297_s28 = scalar_lea.vmem %s1681_s29, 2048  ;;  %p1751_p12 = scmp.ne.s32.totalorder %s1747_s30, 0 }
  0x71   : > { %1061 = vmatpush3.bf16.msra.mxu0 %v1060_v7  ;;  %v1064_v13 = vpack.c.bf16 %v290_v10, %v289_v9  ;;  %v1066_v14 = vpack.c.bf16 %v308_v12, %v307_v11  ;;  %v292_v16 = vld [vmem:[#allocation6 + $0x28] sm:$0xff]  ;;  %v309_v17 = vld [vmem:[#allocation6 + $0xb0] sm:$0xff]  ;;  %v310_v18 = vld [vmem:[#allocation6 + $0xb8] sm:$0xff]  ;;  %p1298_p8 = scmp.ne.s32.totalorder %s1681_s29, %s1297_s28  ;;  %s1392_s18 = smov [#allocation9]  }
  0x72   : > { %1063 = vmatprep.subr.bf16.mxu0 %v1062_v8  ;;  %v1068_v19 = vpack.c.bf16 %v292_v16, %v291_v15  ;;  %v1070_v20 = vpack.c.bf16 %v310_v18, %v309_v17  ;;  %v293_v21 = vld [vmem:[#allocation6 + $0x30] sm:$0xff]  ;;  %v294_v22 = vld [vmem:[#allocation6 + $0x38] sm:$0xff]  ;;  %v311_v23 = vld [vmem:[#allocation6 + $0xc0] sm:$0xff]  ;;  %s1301_s8 = sshll.u32 %s1392_s18, 4  ;;  %s1302_s8 = int_to_ptr.vmem [resolvable:$false] %s1301_s8 }
  0x73   : > { %v312_v24 = vld [vmem:[#allocation6 + $0xc8] sm:$0xff]  ;;  %v1072_v26 = vpack.c.bf16 %v294_v22, %v293_v21  ;;  %v295_v28 = vld [vmem:[#allocation6 + $0x40] sm:$0xff]  ;;  %v313_v30 = vld [vmem:[#allocation6 + $0xd0] sm:$0xff]  ;;  %p1299_p1 = pnand %p1298_p8, %p1751_p12  ;;  %s1303_s21 = scalar_lea.vmem %s1302_s8, 4096 }
  0x74   : > { %v336_v25 = vld [vmem:[%s1612_s9 + $0x8] sm:$0xff]  ;;  %v1074_v27 = vpack.c.bf16 %v312_v24, %v311_v23  ;;  %v314_v31 = vld [vmem:[#allocation6 + $0xd8] sm:$0xff]  ;;  %v297_v34 = vld [vmem:[#allocation6 + $0x50] sm:$0xff]  ;;  %p1304_p3 = scmp.lt.s32.totalorder %s1681_s29, %s1302_s8  ;;  %p1305_p5 = scmp.lt.s32.totalorder %s1303_s21, %s1297_s28 }
  0x75   : > { %1065 = vmatpush3.bf16.msra.mxu0 %v1064_v13  ;;  %431 = vmatprep.mubr.f32.mxu0 %v336_v25  ;;  %v296_v29 = vld [vmem:[#allocation6 + $0x48] sm:$0xff]  ;;  %v1078_v33 = vpack.c.bf16 %v314_v31, %v313_v30  ;;  %v298_v35 = vld [vmem:[#allocation6 + $0x58] sm:$0xff]  ;;  %v315_v36 = vld [vmem:[#allocation6 + $0xe0] sm:$0xff]  ;;  %p1300_p10 = pneg %p1299_p1 }
  0x76   : > { %1067 = vmatprep.subr.bf16.mxu0 %v1066_v14  ;;  %v1076_v32 = vpack.c.bf16 %v296_v29, %v295_v28  ;;  %v316_v37 = vld [vmem:[#allocation6 + $0xe8] sm:$0xff]  ;;  %v1080_v38 = vpack.c.bf16 %v298_v35, %v297_v34  ;;  %v299_v39 = vld [vmem:[#allocation6 + $0x60] sm:$0xff]  ;;  %v317_v42 = vld [vmem:[#allocation6 + $0xf0] sm:$0xff]  ;;  %p1306_p9 = por %p1305_p5, %p1304_p3 }
  0x77   : > { %v300_v40 = vld [vmem:[#allocation6 + $0x68] sm:$0xff]  ;;  %v1082_v41 = vpack.c.bf16 %v316_v37, %v315_v36  ;;  %v563_v43 = vld [vmem:[#allocation8] sm:$0xff]  ;;  %v318_v45 = vld [vmem:[#allocation6 + $0xf8] sm:$0xff] }
  0x78   : > { %v564_v44 = vld [vmem:[#allocation8 + $0x8] sm:$0xff]  ;;  %v565_v47 = vld [vmem:[#allocation8 + $0x10] sm:$0xff]  ;;  %v566_v48 = vld [vmem:[#allocation8 + $0x18] sm:$0xff]  ;;  %v1084_v52 = vpack.c.bf16 %v300_v40, %v299_v39  ;;  %v1086_v53 = vpack.c.bf16 %v318_v45, %v317_v42  ;;  %p1307_p11 = pnand %p1306_p9, %p1300_p10 }
  0x79   : > { %1069 = vmatpush3.bf16.msra.mxu0 %v1068_v19  ;;  %v1090_v46 = vpack.c.bf16 %v564_v44, %v563_v43  ;;  %v1094_v49 = vpack.c.bf16 %v566_v48, %v565_v47  ;;  %v567_v50 = vld [vmem:[#allocation8 + $0x20] sm:$0xff]  ;;  %v568_v51 = vld [vmem:[#allocation8 + $0x28] sm:$0xff]  ;;  %v301_v54 = vld [vmem:[#allocation6 + $0x70] sm:$0xff] }
  0x7a   : > { %1071 = vmatprep.subr.bf16.mxu0 %v1070_v20  ;;  %v302_v55 = vld [vmem:[#allocation6 + $0x78] sm:$0xff]  ;;  %v1098_v56 = vpack.c.bf16 %v568_v51, %v567_v50  ;;  %v569_v57 = vld [vmem:[#allocation8 + $0x30] sm:$0xff]  ;;  %v571_v61 = vld [vmem:[#allocation8 + $0x40] sm:$0xff] }
  0x7b   : > { %1091 = vmatprep.subr.bf16.mxu1 %v1090_v46  ;;  %v570_v58 = vld [vmem:[#allocation8 + $0x38] sm:$0xff]  ;;  %v1088_v59 = vpack.c.bf16 %v302_v55, %v301_v54  ;;  %v572_v62 = vld [vmem:[#allocation8 + $0x48] sm:$0xff]  ;;  %v335_v63 = vld [vmem:[%s1612_s9] sm:$0xff] }
  0x7c   : > { %1093 = vmatpush3.bf16.msra.mxu1 %v1090_v46  ;;  %v1102_v60 = vpack.c.bf16 %v570_v58, %v569_v57  ;;  %v338_v0 = vld [vmem:[%s1612_s9 + $0x18] sm:$0xff]  ;;  %v1106_v1 = vpack.c.bf16 %v572_v62, %v571_v61  ;;  %v573_v2 = vld [vmem:[#allocation8 + $0x50] sm:$0xff]  ;;  %v340_v5 = vld [vmem:[%s1612_s9 + $0x28] sm:$0xff] }
  0x7d   : > { %1073 = vmatpush3.bf16.msra.mxu0 %v1072_v26  ;;  %1095 = vmatprep.subr.bf16.mxu1 %v1094_v49  ;;  %v574_v3 = vld [vmem:[#allocation8 + $0x58] sm:$0xff]  ;;  %v337_v4 = vld [vmem:[%s1612_s9 + $0x10] sm:$0xff]  ;;  %v339_v7 = vld [vmem:[%s1612_s9 + $0x20] sm:$0xff] }
  0x7e   : > { %1075 = vmatprep.subr.bf16.mxu0 %v1074_v27  ;;  %v1110_v6 = vpack.c.bf16 %v574_v3, %v573_v2  ;;  %v342_v8 = vld [vmem:[%s1612_s9 + $0x38] sm:$0xff]  ;;  %v341_v9 = vld [vmem:[%s1612_s9 + $0x30] sm:$0xff]  ;;  %v344_v10 = vld [vmem:[%s1612_s9 + $0x48] sm:$0xff] }
  0x7f   : > { %v343_v11 = vld [vmem:[%s1612_s9 + $0x40] sm:$0xff]  ;;  %v346_v12 = vld [vmem:[%s1612_s9 + $0x58] sm:$0xff]  ;;  %v345_v13 = vld [vmem:[%s1612_s9 + $0x50] sm:$0xff] }
  0x80   : > { %1097 = vmatpush3.bf16.msra.mxu1 %v1094_v49  ;;  %v348_v14 = vld [vmem:[%s1612_s9 + $0x68] sm:$0xff]  ;;  %v347_v15 = vld [vmem:[%s1612_s9 + $0x60] sm:$0xff]  ;;  %v350_v16 = vld [vmem:[%s1612_s9 + $0x78] sm:$0xff] }
  0x81   : > { %1077 = vmatpush3.bf16.msra.mxu0 %v1076_v32  ;;  %1099 = vmatprep.subr.bf16.mxu1 %v1098_v56  ;;  %v349_v17 = vld [vmem:[%s1612_s9 + $0x70] sm:$0xff]  ;;  %v352_v18 = vld [vmem:[%s1612_s9 + $0x88] sm:$0xff]  ;;  %v351_v19 = vld [vmem:[%s1612_s9 + $0x80] sm:$0xff] }
  0x82   : > { %1079 = vmatprep.subr.bf16.mxu0 %v1078_v33  ;;  %v354_v20 = vld [vmem:[%s1612_s9 + $0x98] sm:$0xff]  ;;  %v353_v21 = vld [vmem:[%s1612_s9 + $0x90] sm:$0xff]  ;;  %v356_v22 = vld [vmem:[%s1612_s9 + $0xa8] sm:$0xff] }
  0x83   : > { %v355_v23 = vld [vmem:[%s1612_s9 + $0xa0] sm:$0xff]  ;;  %v358_v24 = vld [vmem:[%s1612_s9 + $0xb8] sm:$0xff]  ;;  %v357_v25 = vld [vmem:[%s1612_s9 + $0xb0] sm:$0xff] }
  0x84   : > { %1101 = vmatpush3.bf16.msra.mxu1 %v1098_v56  ;;  %v360_v26 = vld [vmem:[%s1612_s9 + $0xc8] sm:$0xff]  ;;  %v359_v27 = vld [vmem:[%s1612_s9 + $0xc0] sm:$0xff]  ;;  %v362_v28 = vld [vmem:[%s1612_s9 + $0xd8] sm:$0xff] }
  0x85   : > { %1081 = vmatpush3.bf16.msra.mxu0 %v1080_v38  ;;  %1103 = vmatprep.subr.bf16.mxu1 %v1102_v60  ;;  %v361_v29 = vld [vmem:[%s1612_s9 + $0xd0] sm:$0xff]  ;;  %v364_v30 = vld [vmem:[%s1612_s9 + $0xe8] sm:$0xff]  ;;  %v363_v31 = vld [vmem:[%s1612_s9 + $0xe0] sm:$0xff] }
  0x86   : > { %1083 = vmatprep.subr.bf16.mxu0 %v1082_v41  ;;  %v366_v32 = vld [vmem:[%s1612_s9 + $0xf8] sm:$0xff]  ;;  %v365_v33 = vld [vmem:[%s1612_s9 + $0xf0] sm:$0xff]  ;;  %v575_v34 = vld [vmem:[#allocation8 + $0x60] sm:$0xff] }
  0x87   : > { %v576_v35 = vld [vmem:[#allocation8 + $0x68] sm:$0xff]  ;;  %v577_v37 = vld [vmem:[#allocation8 + $0x70] sm:$0xff]  ;;  %v578_v38 = vld [vmem:[#allocation8 + $0x78] sm:$0xff] }
  0x88   : > { %1105 = vmatpush3.bf16.msra.mxu1 %v1102_v60  ;;  %v1114_v36 = vpack.c.bf16 %v576_v35, %v575_v34  ;;  %v1118_v39 = vpack.c.bf16 %v578_v38, %v577_v37 }
  0x89   : > { %1085 = vmatpush3.bf16.msra.mxu0 %v1084_v52  ;;  %1107 = vmatprep.subr.bf16.mxu1 %v1106_v1 }
  0x8a   : > { %1087 = vmatprep.subr.bf16.mxu0 %v1086_v53 }
  0x8c   : > { %1109 = vmatpush3.bf16.msra.mxu1 %v1106_v1 }
  0x8d   : > { %1089 = vmatpush3.bf16.msra.mxu0 %v1088_v59  ;;  %1111 = vmatprep.subr.bf16.mxu1 %v1110_v6 }
  0x90   : > { %432 = vmatmul.mubr.f32.vlgmr.msra.gmra.mrb[0].mxu0 %v335_v63  ;;  %1113 = vmatpush3.bf16.msra.mxu1 %v1110_v6 }
  0x91   : > { %436 = vmatprep.mubr.f32.mxu0 %v338_v0  ;;  %1115 = vmatprep.subr.bf16.mxu1 %v1114_v36 }
  0x94   : > { %437 = vmatmul.mubr.f32.gmra.mrb[2].mxu0 %v337_v4  ;;  %1117 = vmatpush3.bf16.msra.mxu1 %v1114_v36 }
  0x95   : > { %441 = vmatprep.mubr.f32.mxu0 %v340_v5  ;;  %1119 = vmatprep.subr.bf16.mxu1 %v1118_v39 }
  0x98   : > { %442 = vmatmul.mubr.f32.gmra.mrb[4].mxu0 %v339_v7  ;;  %1121 = vmatpush3.bf16.msra.mxu1 %v1118_v39 }
  0x99   : > { %446 = vmatprep.mubr.f32.mxu0 %v342_v8 }
  0x9c   : > { %447 = vmatmul.mubr.f32.gmra.mrb[6].mxu0 %v341_v9 }
  0x9d   : > { %451 = vmatprep.mubr.f32.mxu0 %v344_v10 }
  0xa0   : > { %452 = vmatmul.mubr.f32.gmra.mrb[8].mxu0 %v343_v11 }
  0xa1   : > { %456 = vmatprep.mubr.f32.mxu0 %v346_v12 }
  0xa4   : > { %457 = vmatmul.mubr.f32.gmra.mrb[10].mxu0 %v345_v13 }
  0xa5   : > { %461 = vmatprep.mubr.f32.mxu0 %v348_v14 }
  0xa8   : > { %462 = vmatmul.mubr.f32.gmra.mrb[12].mxu0 %v347_v15 }
  0xa9   : > { %466 = vmatprep.mubr.f32.mxu0 %v350_v16 }
  0xac   : > { %467 = vmatmul.mubr.f32.gmra.mrb[14].mxu0 %v349_v17 }
  0xad   : > { %471 = vmatprep.mubr.f32.mxu0 %v352_v18 }
  0xb0   : > { %472 = vmatmul.mubr.f32.gmra.mrb[16].mxu0 %v351_v19 }
  0xb1   : > { %476 = vmatprep.mubr.f32.mxu0 %v354_v20 }
  0xb4   : > { %477 = vmatmul.mubr.f32.gmra.mrb[18].mxu0 %v353_v21 }
  0xb5   : > { %481 = vmatprep.mubr.f32.mxu0 %v356_v22 }
  0xb8   : > { %482 = vmatmul.mubr.f32.gmra.mrb[20].mxu0 %v355_v23 }
  0xb9   : > { %486 = vmatprep.mubr.f32.mxu0 %v358_v24  ;;  %v881_v24 = vld [vmem:[%s1735_s3] ss:$0 sm:$0xff] }
  0xbc   : > { %487 = vmatmul.mubr.f32.gmra.mrb[22].mxu0 %v357_v25 }
  0xbd   : > { %491 = vmatprep.mubr.f32.mxu0 %v360_v26 }
  0xc0   : > { %492 = vmatmul.mubr.f32.gmra.mrb[24].mxu0 %v359_v27 }
  0xc1   : > { %496 = vmatprep.mubr.f32.mxu0 %v362_v28 }
  0xc4   : > { %497 = vmatmul.mubr.f32.gmra.mrb[26].mxu0 %v361_v29 }
  0xc5   : > { %501 = vmatprep.mubr.f32.mxu0 %v364_v30 }
  0xc8   : > { %502 = vmatmul.mubr.f32.gmra.mrb[28].mxu0 %v363_v31 }
  0xc9   : > { %506 = vmatprep.mubr.f32.mxu0 %v366_v32 }
  0xcc   : > { %507 = vmatmul.mubr.f32.gmra.mrb[30].mxu0 %v365_v33 }
 0x163   : > { %v922_v40 = vpop.f32.mrb[0].mxu0 }
 0x164   : > { %v923_v41 = vpop.f32.mrb[1].mxu0 }
 0x165   : > { %v924_v42 = vadd.f32 %v923_v41, %v922_v40 }
 0x167   : > { %v925_v43 = vpop.f32.mrb[2].mxu0  ;;  %1034 = vmatprep.mubr.f32.mxu1 %v924_v42 }
 0x168   : > { %v926_v44 = vpop.f32.mrb[3].mxu0 }
 0x169   : > { %v927_v45 = vadd.f32 %v926_v44, %v925_v43 }
 0x16b   : > { %v928_v46 = vpop.f32.mrb[4].mxu0  ;;  %1035 = vmatmul.mubr.f32.vlgmr.msra.gmra.mrb[0].mxu1 %v927_v45 }
 0x16c   : > { %v929_v47 = vpop.f32.mrb[5].mxu0 }
 0x16d   : > { %v930_v48 = vadd.f32 %v929_v47, %v928_v46 }
 0x16f   : > { %v931_v49 = vpop.f32.mrb[6].mxu0  ;;  %1037 = vmatprep.mubr.f32.mxu1 %v930_v48 }
 0x170   : > { %v932_v50 = vpop.f32.mrb[7].mxu0 }
 0x171   : > { %v933_v51 = vadd.f32 %v932_v50, %v931_v49 }
 0x173   : > { %v934_v52 = vpop.f32.mrb[8].mxu0  ;;  %1038 = vmatmul.mubr.f32.gmra.mrb[2].mxu1 %v933_v51 }
 0x174   : > { %v935_v53 = vpop.f32.mrb[9].mxu0 }
 0x175   : > { %v936_v54 = vadd.f32 %v935_v53, %v934_v52 }
 0x177   : > { %v937_v55 = vpop.f32.mrb[10].mxu0  ;;  %1040 = vmatprep.mubr.f32.mxu1 %v936_v54 }
 0x178   : > { %v938_v56 = vpop.f32.mrb[11].mxu0 }
 0x179   : > { %v939_v57 = vadd.f32 %v938_v56, %v937_v55 }
 0x17b   : > { %v940_v58 = vpop.f32.mrb[12].mxu0  ;;  %1041 = vmatmul.mubr.f32.gmra.mrb[4].mxu1 %v939_v57 }
 0x17c   : > { %v941_v59 = vpop.f32.mrb[13].mxu0 }
 0x17d   : > { %v942_v60 = vadd.f32 %v941_v59, %v940_v58 }
 0x17f   : > { %v943_v61 = vpop.f32.mrb[14].mxu0  ;;  %1043 = vmatprep.mubr.f32.mxu1 %v942_v60 }
 0x180   : > { %v944_v62 = vpop.f32.mrb[15].mxu0 }
 0x181   : > { %v945_v63 = vadd.f32 %v944_v62, %v943_v61 }
 0x183   : > { %v946_v0 = vpop.f32.mrb[16].mxu0  ;;  %1044 = vmatmul.mubr.f32.gmra.mrb[6].mxu1 %v945_v63 }
 0x184   : > { %v947_v1 = vpop.f32.mrb[17].mxu0 }
 0x185   : > { %v948_v2 = vadd.f32 %v947_v1, %v946_v0 }
 0x187   : > { %v949_v3 = vpop.f32.mrb[18].mxu0  ;;  %1046 = vmatprep.mubr.f32.mxu1 %v948_v2 }
 0x188   : > { %v950_v4 = vpop.f32.mrb[19].mxu0 }
 0x189   : > { %v951_v5 = vadd.f32 %v950_v4, %v949_v3 }
 0x18b   : > { %v952_v6 = vpop.f32.mrb[20].mxu0  ;;  %1047 = vmatmul.mubr.f32.gmra.mrb[8].mxu1 %v951_v5 }
 0x18c   : > { %v953_v7 = vpop.f32.mrb[21].mxu0 }
 0x18d   : > { %v954_v8 = vadd.f32 %v953_v7, %v952_v6 }
 0x18f   : > { %v955_v9 = vpop.f32.mrb[22].mxu0  ;;  %1049 = vmatprep.mubr.f32.mxu1 %v954_v8 }
 0x190   : > { %v956_v10 = vpop.f32.mrb[23].mxu0 }
 0x191   : > { %v957_v11 = vadd.f32 %v956_v10, %v955_v9 }
 0x193   : > { %v958_v12 = vpop.f32.mrb[24].mxu0  ;;  %1050 = vmatmul.mubr.f32.gmra.mrb[10].mxu1 %v957_v11 }
 0x194   : > { %v959_v13 = vpop.f32.mrb[25].mxu0 }
 0x195   : > { %v960_v14 = vadd.f32 %v959_v13, %v958_v12 }
 0x197   : > { %v961_v15 = vpop.f32.mrb[26].mxu0  ;;  %1052 = vmatprep.mubr.f32.mxu1 %v960_v14 }
 0x198   : > { %v962_v16 = vpop.f32.mrb[27].mxu0 }
 0x199   : > { %v963_v17 = vadd.f32 %v962_v16, %v961_v15 }
 0x19b   : > { %v964_v18 = vpop.f32.mrb[28].mxu0  ;;  %1053 = vmatmul.mubr.f32.gmra.mrb[12].mxu1 %v963_v17 }
 0x19c   : > { %v965_v19 = vpop.f32.mrb[29].mxu0 }
 0x19d   : > { %v966_v20 = vadd.f32 %v965_v19, %v964_v18 }
 0x19f   : > { %v967_v21 = vpop.f32.mrb[30].mxu0  ;;  %1055 = vmatprep.mubr.f32.mxu1 %v966_v20 }
 0x1a0   : > { %v968_v22 = vpop.f32.mrb[31].mxu0 }
 0x1a1   : > { %v969_v23 = vadd.f32 %v968_v22, %v967_v21 }
 0x1a3   : > { %1056 = vmatmul.mubr.f32.gmra.mrb[14].mxu1 %v969_v23 }
 0x23e   : > { %v1036_v25 = vpop.f32.mrb[0].mxu1 }
 0x23f   : > { %v658_v26 = vadd.f32 %v1036_v25, %v881_v24  ;;  %v652_v27 = vpop.f32.mrb[1].mxu1 }
 0x240   : > { %v653_v28 = vadd.f32 %v881_v24, %v652_v27 }
 0x241   : > { %732 = vst [vmem:[%s1658_s12 + $0x8] sm:$0xff] %v658_v26 }
 0x242   : > { %731 = vst [vmem:[%s1658_s12] sm:$0xff] %v653_v28 }
 0x246   : > { %v1039_v29 = vpop.f32.mrb[2].mxu1 }
 0x247   : > { %v668_v30 = vadd.f32 %v1039_v29, %v881_v24  ;;  %v662_v31 = vpop.f32.mrb[3].mxu1 }
 0x248   : > { %v663_v32 = vadd.f32 %v881_v24, %v662_v31 }
 0x249   : > { %734 = vst [vmem:[%s1658_s12 + $0x18] sm:$0xff] %v668_v30 }
 0x24a   : > { %733 = vst [vmem:[%s1658_s12 + $0x10] sm:$0xff] %v663_v32 }
 0x24e   : > { %v1042_v33 = vpop.f32.mrb[4].mxu1 }
 0x24f   : > { %v678_v34 = vadd.f32 %v1042_v33, %v881_v24  ;;  %v672_v35 = vpop.f32.mrb[5].mxu1 }
 0x250   : > { %v673_v36 = vadd.f32 %v881_v24, %v672_v35 }
 0x251   : > { %736 = vst [vmem:[%s1658_s12 + $0x28] sm:$0xff] %v678_v34 }
 0x252   : > { %735 = vst [vmem:[%s1658_s12 + $0x20] sm:$0xff] %v673_v36 }
 0x256   : > { %v1045_v37 = vpop.f32.mrb[6].mxu1 }
 0x257   : > { %v688_v38 = vadd.f32 %v1045_v37, %v881_v24  ;;  %v682_v39 = vpop.f32.mrb[7].mxu1 }
 0x258   : > { %v683_v40 = vadd.f32 %v881_v24, %v682_v39 }
 0x259   : > { %738 = vst [vmem:[%s1658_s12 + $0x38] sm:$0xff] %v688_v38 }
 0x25a   : > { %737 = vst [vmem:[%s1658_s12 + $0x30] sm:$0xff] %v683_v40 }
 0x25e   : > { %v1048_v41 = vpop.f32.mrb[8].mxu1 }
 0x25f   : > { %v698_v42 = vadd.f32 %v1048_v41, %v881_v24  ;;  %v692_v43 = vpop.f32.mrb[9].mxu1 }
 0x260   : > { %v693_v44 = vadd.f32 %v881_v24, %v692_v43 }
 0x261   : > { %740 = vst [vmem:[%s1658_s12 + $0x48] sm:$0xff] %v698_v42 }
 0x262   : > { %739 = vst [vmem:[%s1658_s12 + $0x40] sm:$0xff] %v693_v44 }
 0x266   : > { %v1051_v45 = vpop.f32.mrb[10].mxu1 }
 0x267   : > { %v708_v46 = vadd.f32 %v1051_v45, %v881_v24  ;;  %v702_v47 = vpop.f32.mrb[11].mxu1 }
 0x268   : > { %v703_v48 = vadd.f32 %v881_v24, %v702_v47 }
 0x269   : > { %742 = vst [vmem:[%s1658_s12 + $0x58] sm:$0xff] %v708_v46 }
 0x26a   : > { %741 = vst [vmem:[%s1658_s12 + $0x50] sm:$0xff] %v703_v48 }
 0x26e   : > { %v1054_v49 = vpop.f32.mrb[12].mxu1 }
 0x26f   : > { %v718_v50 = vadd.f32 %v1054_v49, %v881_v24  ;;  %v712_v51 = vpop.f32.mrb[13].mxu1 }
 0x270   : > { %v713_v52 = vadd.f32 %v881_v24, %v712_v51 }
 0x271   : > { %744 = vst [vmem:[%s1658_s12 + $0x68] sm:$0xff] %v718_v50 }
 0x272   : > { %743 = vst [vmem:[%s1658_s12 + $0x60] sm:$0xff] %v713_v52 }
 0x276   : > { %v1057_v53 = vpop.f32.mrb[14].mxu1 }
 0x277   : > { %v728_v54 = vadd.f32 %v1057_v53, %v881_v24  ;;  %v722_v55 = vpop.f32.mrb[15].mxu1 }
 0x278   : > { %v723_v56 = vadd.f32 %v881_v24, %v722_v55 }
 0x279   : > { %746 = vst [vmem:[%s1658_s12 + $0x78] sm:$0xff] %v728_v54 }
 0x27a   : > { %745 = vst [vmem:[%s1658_s12 + $0x70] sm:$0xff] %v723_v56 }
 0x27b   : > { %1310 = shalt.err (!%p1307_p11)
}
 0x27c   : > { %s1311_s10 = scalar_lea.hbm %s1679_s24, 2048  ;;  %s1315_s25 = scalar_lea.hbm %s1736_s4, 4096 }
 0x27d   : > { %p1312_p0 = scmp.ne.s32.totalorder %s1679_s24, %s1311_s10  ;;  %p1316_p6 = scmp.lt.u32.totalorder %s1679_s24, %s1736_s4 }
 0x27e   : > { %p1317_p7 = scmp.lt.u32.totalorder %s1315_s25, %s1311_s10  ;;  %p1319_p8 = scmp.lt.u32.totalorder %s1311_s10, %s1679_s24 }
 0x27f   : > { %p1313_p4 = pnand %p1312_p0, %p1751_p12 }
 0x280   : > { %p1318_p2 = por %p1317_p7, %p1316_p6 }
 0x281   : > { %p1314_p13 = pneg %p1313_p4 }
 0x282   : > { %p1320_p1 = por %p1319_p8, %p1318_p2 }
 0x284   : > { %p1321_p10 = pnand %p1320_p1, %p1314_p13 }
 0x286   : > { %1324 = shalt.err (!%p1321_p10)
}
 0x287   : > { %s1393_s13 = smov 128   ;;  %s1394_s14 = smov 8  }
 0x288   : > { %1132 = dma.vmem_to_hbm [thread:$0]  (%p1751_p12), %s1681_s29, 2048, %s1679_s24, %s748_s7, %s1393_s13, %s1393_s13, %s1394_s14  }
 0x289 PF: > { %s776_s11 = sand.u32 1, %s1363_s15   ;;  %p1752_p3 = scmp.ne.s32.totalorder %s1744_s26, 0 }
 0x28a   : > { %p1753_p5 = scmp.ge.s32.totalorder %s1383_s20, 2  ;;  %s777_s28 = scalar_lea.sflag [#allocation5], %s776_s11 }
 0x28c   : > { %p1146_p9 = pnand %p1753_p5, %p1752_p3 }
 0x28e   : > { %1358 = dma.done.wait (!%p1146_p9), %s777_s28, 2048  }
 0x28f   : > { %1360 = vsyncadd (!%p1146_p9), %s777_s28, 4294965248  ;;  %s21_s20 = sadd.s32 1, %s1383_s20   ;;  %s1754_s15 = smov %s1367_s16 }
 0x290   : > { %p18_p11 = scmp.ge.s32.totalorder %s21_s20, 4   ;;  %s1755_s16 = smov %s1371_s17 }
 0x291   : > { %s1756_s17 = smov %s1562_s22  ;;  %s1757_s18 = smov %s1379_s19 }
 0x292   : > { %s1758_s19 = smov %s1760_s5  ;;  %20 = sbr.rel (!%p18_p11) target bundleno = 7 (0x7), region = 98 }
 0x299   :  { %782 = vsyncpa [#allocation4], 1 }
 0x29a   :  { %784 = vsyncpa [#allocation4 + $0x1], 1 }
 0x29b   :  { %785 = vsyncpa [#allocation7], 1 }
 0x29c   :  { %786 = vsyncpa [#allocation5], 1 }
 0x29d   :  { %788 = vsyncpa [#allocation5 + $0x1], 1 }

</bundles_post_ra>
